<compile_context>
chip_gen: v5e
topology: v5e:2x2
jax: 0.10.0
libtpu: 0.0.40
codegen_flags: <defaults>
</compile_context>

<pallas_src>
import functools

import jax
import jax.numpy as jnp
from jax.experimental import pallas as pl
from jax.experimental.pallas import tpu as pltpu


def _round_up(x, m):
    return (x + m - 1) // m * m


def fcrb_kernel(x_ref, w_ref, p_ref, o_ref, *, seed, c_out_pad, inv_n):
    j = pl.program_id(0)  # which C_out tile

    # ---- Linear (MXU): bf16 operands, f32 accumulation.  The Linear bias is
    # NOT added here; it is folded (exactly) into the BN shift below. ----
    y = jnp.dot(x_ref[...], w_ref[...],
                preferred_element_type=jnp.float32)                  # [N, T] f32

    b = p_ref[0:1, :]                                                # [1, T]
    gamma = p_ref[1:2, :]
    beta = p_ref[2:3, :]

    # ---- BatchNorm1d (training: batch mean, biased var, eps=1e-5) + ReLU,
    # fused into a single y*scale + shift pass.  Batch sums are pushed onto
    # the MXU (ones-row matmul) instead of an XLU cross-sublane reduction. ----
    n = y.shape[0]
    ones = jnp.ones((1, n), jnp.float32)
    s1 = jnp.dot(ones, y, preferred_element_type=jnp.float32)        # sum(xW)    [1, T]
    s2 = jnp.dot(ones, y * y, preferred_element_type=jnp.float32)    # sum((xW)^2)[1, T]
    mu = s1 * inv_n                                                  # E[xW]
    var = jnp.maximum(s2 * inv_n - mu * mu, 0.0)                     # Var[xW] == Var[xW+b]
    scale = gamma * jax.lax.rsqrt(var + 1e-5)
    mean = mu + b                                                    # E[xW + b]
    # (xW + b - mean)*scale + beta  ==  y*scale + (beta + (b - mean)*scale)
    shift = beta + (b - mean) * scale
    z = jnp.maximum(y * scale + shift, 0.0)                          # BN + ReLU

    # ---- Dropout p=0.5 (training), scaled by 1/(1-p) = 2.
    # Counter-based integer hash (splitmix-style) of the GLOBAL element index:
    # portable, tiling-invariant, decorrelated across C_out tiles. ----
    t = z.shape[1]
    row = jax.lax.broadcasted_iota(jnp.int32, (n, t), 0)
    col = jax.lax.broadcasted_iota(jnp.int32, (n, t), 1) + j * t
    h = (row * c_out_pad + col).astype(jnp.uint32) ^ jnp.uint32(seed)
    h = (h ^ (h >> 16)) * jnp.uint32(0x7FEB352D)
    h = (h ^ (h >> 15)) * jnp.uint32(0x846CA68B)
    h = h ^ (h >> 16)
    keep = (h & jnp.uint32(0x80000000)) == 0                         # P(keep)=0.5
    o_ref[...] = jnp.where(keep, z + z, 0.0).astype(o_ref.dtype)


def _pick_tile_cout(k_pad, c_out):
    # Keep each (double-buffered) bf16 weight tile under ~8 MiB so two buffers
    # plus x / params / output fit the 32 MiB scoped-VMEM limit on every chip.
    budget = 8 * 1024 * 1024
    t = (budget // (k_pad * 2) // 128) * 128
    return max(128, min(512, _round_up(c_out, 128), t))


def fcrb_forward(x, w, b, gamma, beta, *, seed=0, tile_cout=None):
    """FCRB forward (training semantics).

    x:     [N, C_in] f32
    w:     [C_out, C_in] f32  (PyTorch nn.Linear weight layout)
    b, gamma, beta: [C_out] f32
    """
    n, c_in = x.shape
    c_out = w.shape[0]

    # Lane-dense padding: K (=C_in) to a multiple of 128 for the MXU; C_out to
    # a multiple of the tile so every output block is an unmasked 128-lane slab.
    k_pad = _round_up(max(c_in, 128), 128)
    if tile_cout is None:
        tile_cout = _pick_tile_cout(k_pad, c_out)
    c_out_pad = _round_up(c_out, tile_cout)

    # bf16 x / W halve the dominant weight HBM stream and double MXU rate;
    # the BN/ReLU/dropout epilogue stays f32 (v5e has no bf16 VPU/EUP).
    x_p = jnp.zeros((n, k_pad), jnp.bfloat16).at[:, :c_in].set(
        x.astype(jnp.bfloat16))
    w_t = jnp.zeros((k_pad, c_out_pad), jnp.bfloat16).at[:c_in, :c_out].set(
        w.T.astype(jnp.bfloat16))
    # Pack bias / gamma / beta into a single params array -> one DMA stream.
    params = jnp.zeros((3, c_out_pad), jnp.float32)
    params = params.at[0, :c_out].set(b)
    params = params.at[1, :c_out].set(gamma)
    params = params.at[2, :c_out].set(beta)

    grid = (c_out_pad // tile_cout,)
    kernel = functools.partial(
        fcrb_kernel,
        seed=int(seed) & 0xFFFFFFFF,
        c_out_pad=c_out_pad,
        inv_n=1.0 / float(n),
    )

    cost = pl.CostEstimate(
        flops=2 * n * k_pad * c_out_pad + 4 * n * c_out_pad,   # matmul + batch stats
        transcendentals=c_out_pad,                              # rsqrt per feature
        bytes_accessed=(x_p.size + w_t.size) * 2
        + params.size * 4
        + n * c_out_pad * 4,
    )

    out = pl.pallas_call(
        kernel,
        out_shape=jax.ShapeDtypeStruct((n, c_out_pad), jnp.float32),
        grid=grid,
        in_specs=[
            pl.BlockSpec((n, k_pad), lambda j: (0, 0)),           # x: whole, resident
            pl.BlockSpec((k_pad, tile_cout), lambda j: (0, j)),   # W tile (pipelined DMA)
            pl.BlockSpec((3, tile_cout), lambda j: (0, j)),       # [bias; gamma; beta] tile
        ],
        out_specs=pl.BlockSpec((n, tile_cout), lambda j: (0, j)),
        compiler_params=pltpu.CompilerParams(
            dimension_semantics=("parallel",),   # shard C_out tiles across TCs (v7x)
            vmem_limit_bytes=32 * 1024 * 1024,   # safe on v5e / v6e / v7x
        ),
        cost_estimate=cost,
    )(x_p, w_t, params)

    return out[:, :c_out]


if __name__ == "__main__":
    # Small FC-shaped problem: batch=8, in_chan=32, out_chan=256.
    # tile_cout=128 -> grid of 2 tiles, exercising the pipelined weight DMA.
    N, C_IN, C_OUT = 8, 32, 256

    key = jax.random.PRNGKey(0)
    kx, kw, kb = jax.random.split(key, 3)

    x = jax.random.normal(kx, (N, C_IN), dtype=jnp.float32)

    # nn.Linear weight layout [C_out, C_in]; BatchNorm1d init gamma=1, beta=0.
    w = jax.random.normal(kw, (C_OUT, C_IN), dtype=jnp.float32) * (1.0 / jnp.sqrt(C_IN))
    b = jax.random.normal(kb, (C_OUT,), dtype=jnp.float32) * 0.1
    gamma = jnp.ones((C_OUT,), dtype=jnp.float32)
    beta = jnp.zeros((C_OUT,), dtype=jnp.float32)

    out = fcrb_forward(x, w, b, gamma, beta, seed=1234, tile_cout=128)
    out = jax.block_until_ready(out)

    assert out.shape == (N, C_OUT) and out.dtype == jnp.float32
    assert bool(jnp.all(jnp.isfinite(out)))
    assert bool(jnp.all(out >= 0.0))  # ReLU -> dropout keeps outputs non-negative
    print("KERNEL_OK")
</pallas_src>

<mosaic_0001>
module attributes {stable_mosaic.version = 11 : i64} {
  func.func @fcrb_kernel(%arg0: i32, %arg1: memref<8x128xbf16, #tpu.memory_space<vmem>>, %arg2: memref<128x128xbf16, #tpu.memory_space<vmem>>, %arg3: memref<3x128xf32, #tpu.memory_space<vmem>>, %arg4: memref<8x128xf32, #tpu.memory_space<vmem>>) attributes {dimension_semantics = [#tpu.dimension_semantics<parallel>], iteration_bounds = array<i64: 2>, scalar_prefetch = 0 : i64, scratch_operands = 0 : i64, tpu.core_type = #tpu.core_type<tc>, window_params = [{pipeline_mode = #tpu.pipeline_mode<synchronous>, transform_indices = @transform_0, window_bounds = array<i64: 8, 128>}, {transform_indices = @transform_1, window_bounds = array<i64: 128, 128>}, {transform_indices = @transform_2, window_bounds = array<i64: 3, 128>}, {transform_indices = @transform_3, window_bounds = array<i64: 8, 128>}]} {
    %c0 = arith.constant 0 : index
    %c0_0 = arith.constant 0 : index
    %0 = vector.load %arg1[%c0, %c0_0] : memref<8x128xbf16, #tpu.memory_space<vmem>>, vector<8x128xbf16>
    %c0_1 = arith.constant 0 : index
    %c0_2 = arith.constant 0 : index
    %1 = vector.load %arg2[%c0_1, %c0_2] : memref<128x128xbf16, #tpu.memory_space<vmem>>, vector<128x128xbf16>
    %cst = arith.constant dense<0.000000e+00> : vector<8x128xf32>
    %2 = tpu.matmul %0, %1, %cst {dimension_numbers = #tpu.dot_dimension_numbers<[1], [0], [0], [1], [0, 0, 1, 1], [], []>} : vector<8x128xbf16>, vector<128x128xbf16>, vector<8x128xf32> -> vector<8x128xf32>
    %c0_3 = arith.constant 0 : index
    %c0_4 = arith.constant 0 : index
    %3 = vector.load %arg3[%c0_3, %c0_4] : memref<3x128xf32, #tpu.memory_space<vmem>>, vector<1x128xf32>
    %c1 = arith.constant 1 : index
    %c0_5 = arith.constant 0 : index
    %4 = vector.load %arg3[%c1, %c0_5] : memref<3x128xf32, #tpu.memory_space<vmem>>, vector<1x128xf32>
    %c2 = arith.constant 2 : index
    %c0_6 = arith.constant 0 : index
    %5 = vector.load %arg3[%c2, %c0_6] : memref<3x128xf32, #tpu.memory_space<vmem>>, vector<1x128xf32>
    %cst_7 = arith.constant 1.000000e+00 : f32
    %6 = vector.broadcast %cst_7 : f32 to vector<1x8xf32>
    %cst_8 = arith.constant dense<0.000000e+00> : vector<1x128xf32>
    %7 = tpu.matmul %6, %2, %cst_8 {dimension_numbers = #tpu.dot_dimension_numbers<[1], [0], [0], [1], [0, 0, 1, 1], [], []>} : vector<1x8xf32>, vector<8x128xf32>, vector<1x128xf32> -> vector<1x128xf32>
    %8 = arith.mulf %2, %2 : vector<8x128xf32>
    %cst_9 = arith.constant dense<0.000000e+00> : vector<1x128xf32>
    %9 = tpu.matmul %6, %8, %cst_9 {dimension_numbers = #tpu.dot_dimension_numbers<[1], [0], [0], [1], [0, 0, 1, 1], [], []>} : vector<1x8xf32>, vector<8x128xf32>, vector<1x128xf32> -> vector<1x128xf32>
    %cst_10 = arith.constant 1.250000e-01 : f32
    %10 = vector.broadcast %cst_10 : f32 to vector<1x128xf32>
    %11 = arith.mulf %7, %10 : vector<1x128xf32>
    %cst_11 = arith.constant 1.250000e-01 : f32
    %12 = vector.broadcast %cst_11 : f32 to vector<1x128xf32>
    %13 = arith.mulf %9, %12 : vector<1x128xf32>
    %14 = arith.mulf %11, %11 : vector<1x128xf32>
    %15 = arith.subf %13, %14 : vector<1x128xf32>
    %cst_12 = arith.constant 0.000000e+00 : f32
    %16 = vector.broadcast %cst_12 : f32 to vector<1x128xf32>
    %17 = arith.maximumf %15, %16 : vector<1x128xf32>
    %cst_13 = arith.constant 9.99999974E-6 : f32
    %18 = vector.broadcast %cst_13 : f32 to vector<1x128xf32>
    %19 = arith.addf %17, %18 : vector<1x128xf32>
    %20 = math.rsqrt %19 : vector<1x128xf32>
    %21 = arith.mulf %4, %20 : vector<1x128xf32>
    %22 = arith.addf %11, %3 : vector<1x128xf32>
    %23 = arith.subf %3, %22 : vector<1x128xf32>
    %24 = arith.mulf %23, %21 : vector<1x128xf32>
    %25 = arith.addf %5, %24 : vector<1x128xf32>
    %26 = vector.broadcast %21 : vector<1x128xf32> to vector<8x128xf32>
    %27 = arith.mulf %2, %26 : vector<8x128xf32>
    %28 = vector.broadcast %25 : vector<1x128xf32> to vector<8x128xf32>
    %29 = arith.addf %27, %28 : vector<8x128xf32>
    %cst_14 = arith.constant 0.000000e+00 : f32
    %30 = vector.broadcast %cst_14 : f32 to vector<8x128xf32>
    %31 = arith.maximumf %29, %30 : vector<8x128xf32>
    %32 = tpu.iota {dimensions = array<i32: 0>} : vector<8x128xi32>
    %33 = tpu.iota {dimensions = array<i32: 1>} : vector<8x128xi32>
    %c128_i32 = arith.constant 128 : i32
    %34 = arith.muli %arg0, %c128_i32 : i32
    %35 = vector.broadcast %34 : i32 to vector<8x128xi32>
    %36 = arith.addi %33, %35 : vector<8x128xi32>
    %c256_i32 = arith.constant 256 : i32
    %37 = vector.broadcast %c256_i32 : i32 to vector<8x128xi32>
    %38 = arith.muli %32, %37 : vector<8x128xi32>
    %39 = arith.addi %38, %36 : vector<8x128xi32>
    %c1234_i32 = arith.constant 1234 : i32
    %40 = vector.broadcast %c1234_i32 : i32 to vector<8x128xi32>
    %41 = arith.xori %39, %40 : vector<8x128xi32>
    %c16_i32 = arith.constant 16 : i32
    %42 = vector.broadcast %c16_i32 : i32 to vector<8x128xi32>
    %43 = arith.shrui %41, %42 : vector<8x128xi32>
    %44 = arith.xori %41, %43 : vector<8x128xi32>
    %c2146121005_i32 = arith.constant 2146121005 : i32
    %45 = vector.broadcast %c2146121005_i32 : i32 to vector<8x128xi32>
    %46 = arith.muli %44, %45 : vector<8x128xi32>
    %c15_i32 = arith.constant 15 : i32
    %47 = vector.broadcast %c15_i32 : i32 to vector<8x128xi32>
    %48 = arith.shrui %46, %47 : vector<8x128xi32>
    %49 = arith.xori %46, %48 : vector<8x128xi32>
    %c-2073254261_i32 = arith.constant -2073254261 : i32
    %50 = vector.broadcast %c-2073254261_i32 : i32 to vector<8x128xi32>
    %51 = arith.muli %49, %50 : vector<8x128xi32>
    %c16_i32_15 = arith.constant 16 : i32
    %52 = vector.broadcast %c16_i32_15 : i32 to vector<8x128xi32>
    %53 = arith.shrui %51, %52 : vector<8x128xi32>
    %54 = arith.xori %51, %53 : vector<8x128xi32>
    %c-2147483648_i32 = arith.constant -2147483648 : i32
    %55 = vector.broadcast %c-2147483648_i32 : i32 to vector<8x128xi32>
    %56 = arith.andi %54, %55 : vector<8x128xi32>
    %c0_i32 = arith.constant 0 : i32
    %57 = vector.broadcast %c0_i32 : i32 to vector<8x128xi32>
    %58 = arith.cmpi eq, %56, %57 : vector<8x128xi32>
    %59 = arith.addf %31, %31 : vector<8x128xf32>
    %cst_16 = arith.constant 0.000000e+00 : f32
    %60 = vector.broadcast %cst_16 : f32 to vector<8x128xf32>
    %61 = arith.select %58, %59, %60 : vector<8x128xi1>, vector<8x128xf32>
    %c0_17 = arith.constant 0 : index
    %c0_18 = arith.constant 0 : index
    %62 = vector.load %arg4[%c0_17, %c0_18] : memref<8x128xf32, #tpu.memory_space<vmem>>, vector<8x128xf32>
    tpu.vector_store %arg4[%c0_17, %c0_18], %61 {strides = array<i32>} : memref<8x128xf32, #tpu.memory_space<vmem>>, vector<8x128xf32>,
    return
  }
  func.func @transform_0(%arg0: i32) -> (i32, i32) {
    %c0_i32 = arith.constant 0 : i32
    %c0_i32_0 = arith.constant 0 : i32
    %c0_i32_1 = arith.constant 0 : i32
    return %c0_i32, %c0_i32_0 : i32, i32
  }
  func.func @transform_1(%arg0: i32) -> (i32, i32) {
    %c0_i32 = arith.constant 0 : i32
    %c0_i32_0 = arith.constant 0 : i32
    return %c0_i32, %arg0 : i32, i32
  }
  func.func @transform_2(%arg0: i32) -> (i32, i32) {
    %c0_i32 = arith.constant 0 : i32
    %c0_i32_0 = arith.constant 0 : i32
    return %c0_i32, %arg0 : i32, i32
  }
  func.func @transform_3(%arg0: i32) -> (i32, i32) {
    %c0_i32 = arith.constant 0 : i32
    %c0_i32_0 = arith.constant 0 : i32
    return %c0_i32, %arg0 : i32, i32
  }
}

</mosaic_0001>

<bundles_post_ra>
// kernel: tpu_custom_call.1
= control target key start
LH: loop header
LB: loop body
LE: loop exit
PB: predicated region body
PF: predicated region fallthrough
CT: control target
= control target key end

     0   :  { %s1026_s0 = inlined_call_operand.hbm [shape: bf16[8,128], index: 0, kind: input, shape index: {}]   ;;  %s1027_s1 = inlined_call_operand.hbm [shape: bf16[128,256], index: 1, kind: input, shape index: {}]   ;;  %s1028_s2 = inlined_call_operand.hbm [shape: f32[3,256], index: 2, kind: input, shape index: {}]   ;;  %s1029_s3 = inlined_call_operand.hbm [shape: f32[8,256], index: 3, kind: output, shape index: {}]  }
   0x1   :  { %1030 = sst [smem:[#allocation12_spill]] %s1026_s0 }
   0x2   :  { %8 = vsyncpa [#allocation3], 0 }
   0x3   :  { %9 = vsyncpa [#allocation6], 0 }
   0x4   :  { %11 = vsyncpa [#allocation6 + $0x1], 0 }
   0x5   :  { %12 = vsyncpa [#allocation4], 0 }
   0x6   :  { %14 = vsyncpa [#allocation4 + $0x1], 0  ;;  %s849_s12 = smov 0   ;;  %s851_s13 = smov 0  }
   0x7   :  { %s853_s14 = smov 0   ;;  %s855_s15 = smov 0  }
   0x8 LB: > { %s870_s16 = sadd.s32 1, %s822_s15   ;;  %s48_s17 = sadd.s32 1, %s818_s14  ;;  %s822_s15 = sphi %s855_s15, %s1041_s15   ;;  %s818_s14 = sphi %s853_s14, %s1040_s14   ;;  %s814_s13 = sphi %s851_s13, %s1039_s13   ;;  %s810_s12 = sphi %s849_s12, %s1038_s12  }
   0x9   : > { %s45_s18 = ssub.s32 %s822_s15, %s870_s16  ;;  %p55_p0 = scmp.ne.s32.totalorder %s818_s14, %s814_s13 }
   0xa   : > { %p46_p1 = scmp.eq.s32.totalorder %s45_s18, 0  ;;  %p56_p2 = scmp.eq.s32.totalorder %s822_s15, 0 }
   0xb   : > { %p620_p4 = scmp.lt.s32.totalorder %s822_s15, 2  ;;  %s149_s20 = sand.u32 1, %s822_s15  }
   0xc   : > { %s881_s19 = scalar_select %p46_p1, %s818_s14, %s48_s17  }
   0xd   : > { %p57_p5 = por %p56_p2, %p55_p0  ;;  %s151_s21 = sand.u32 1, %s818_s14  }
   0xe   : > { %s538_s22 = sshll.u32 %s151_s21, 6  ;;  %s539_s23 = sshll.u32 %s822_s15, 2 }
   0xf   : > { %s157_s26 = scalar_lea.hbm %s1027_s1, %s539_s23  ;;  %s153_s28 = scalar_lea.vmem [#allocation5], %s538_s22 }
  0x10   : > { %s158_s27 = sshll.u32 %s157_s26, 4  ;;  %s160_s29 = sshll.u32 %s153_s28, 4  ;;  %s159_s27 = int_to_ptr.hbm [resolvable:$true] %s158_s27  ;;  %s161_s29 = int_to_ptr.vmem [resolvable:$true] %s160_s29 }
  0x11   : > { %p898_p6 = pnand %p620_p4, %p57_p5  ;;  %s902_s4 = scalar_lea.sflag [#allocation6], %s149_s20 }
  0x12   : > { %s662_s5 = sshra.s32 %s159_s27, 4  ;;  %s669_s9 = scalar_lea.hbm %s1027_s1, 128  ;;  %s663_s5 = int_to_ptr.hbm [resolvable:$true] %s662_s5 }
  0x13   : > { %s664_s6 = scalar_lea.hbm %s663_s5, 64  ;;  %p666_p8 = pneg %p898_p6 }
  0x14   : > { %p665_p7 = scmp.ne.s32.totalorder %s663_s5, %s664_s6  ;;  %p670_p11 = scmp.lt.s32.totalorder %s663_s5, %s1027_s1 }
  0x15   : > { %p671_p12 = scmp.lt.s32.totalorder %s669_s9, %s664_s6 }
  0x16   : > { %p667_p9 = pnand %p666_p8, %p665_p7 }
  0x17   : > { %p672_p13 = por %p671_p12, %p670_p11 }
  0x18   : > { %p668_p10 = pneg %p667_p9 }
  0x1a   : > { %p673_p1 = pnand %p672_p13, %p668_p10 }
  0x1c   : > { %676 = shalt.err (!%p673_p1)
}
  0x1d   : > { %s824_s17 = smov 128   ;;  %s825_s18 = smov 64  }
  0x1e   : > { %s826_s20 = smov 4   ;;  %s919_s22 = sadd.s32 4294967295, %s822_s15  }
  0x1f   : > { %611 = dma.hbm_to_vmem [thread:$0]  (!%p898_p6), %s159_s27, 1024, %s161_s29, %s902_s4, %s824_s17, %s825_s18, %s826_s20  }
  0x20   : > { %s534_s24 = sadd.s32 4294967294, %s822_s15   ;;  %p61_p2 = scmp.ne.s32.totalorder %s814_s13, %s810_s12 }
  0x21   : > { %p62_p4 = scmp.eq.s32.totalorder %s919_s22, 0  ;;  %p111_p5 = scmp.eq.s32.totalorder %s919_s22, 1 }
  0x22   : > { %p117_p7 = scmp.eq.s32.totalorder %s534_s24, 1  ;;  %p535_p9 = scmp.ge.s32.totalorder %s822_s15, 1 }
  0x23   : > { %p929_p10 = por %p62_p4, %p61_p2  ;;  %p936_p11 = por %p111_p5, %p55_p0 }
  0x24   : > { %p940_p12 = por %p117_p7, %p61_p2  ;;  %p124_p13 = scmp.lt.s32.totalorder %s822_s15, 3 }
  0x25   : > { %s1035_s0 = sld [smem:[#allocation12_spill]]  ;;  %s540_s7 = sshll.u32 %s151_s21, 2 }
  0x26   : > { %p948_p1 = pnand %p535_p9, %p124_p13  ;;  %s827_s8 = smov [#allocation2]  }
  0x27   : > { %s138_s9 = sshll.u32 %s827_s8, 4  ;;  %s178_s17 = scalar_lea.hbm %s1028_s2, %s539_s23  ;;  %s139_s9 = int_to_ptr.vmem [resolvable:$true] %s138_s9 }
  0x28   : > { %p604_p0 = pneg %p948_p1  ;;  %s180_s18 = sshll.u32 %s178_s17, 4  ;;  %s181_s18 = int_to_ptr.hbm [resolvable:$true] %s180_s18 }
  0x29   : > { %s174_s20 = scalar_lea.vmem [#allocation7], %s540_s7  ;;  %s722_s21 = sshra.s32 %s181_s18, 4  ;;  %s723_s21 = int_to_ptr.hbm [resolvable:$true] %s722_s21 }
  0x2a   : > { %p605_p2 = pnand %p604_p0, %p62_p4  ;;  %s182_s24 = sshll.u32 %s174_s20, 4  ;;  %s183_s24 = int_to_ptr.vmem [resolvable:$true] %s182_s24 }
  0x2b   : > { %s136_s5 = sshll.u32 %s1035_s0, 4  ;;  %s724_s28 = scalar_lea.hbm %s723_s21, 4  ;;  %s137_s5 = int_to_ptr.hbm [resolvable:$true] %s136_s5 }
  0x2c   : > { %607 = dma.hbm_to_vmem [thread:$0]  (!%p605_p2), %s137_s5, 64, %s139_s9, [#allocation3]  }
  0x2d   : > { %p725_p5 = scmp.ne.s32.totalorder %s723_s21, %s724_s28  ;;  %s729_s0 = scalar_lea.hbm %s1028_s2, 8 }
  0x2e   : > { %p730_p13 = scmp.lt.s32.totalorder %s723_s21, %s1028_s2  ;;  %p731_p0 = scmp.lt.s32.totalorder %s729_s0, %s724_s28 }
  0x2f   : > { %p727_p7 = pnand %p725_p5, %p666_p8 }
  0x30   : > { %p732_p3 = por %p731_p0, %p730_p13 }
  0x31   : > { %p728_p9 = pneg %p727_p7 }
  0x33   : > { %p733_p2 = pnand %p732_p3, %p728_p9 }
  0x35   : > { %736 = shalt.err (!%p733_p2)
}
  0x36   : > { %614 = dma.hbm_to_vmem [thread:$0]  (!%p898_p6), %s181_s18, 64, %s183_s24, %s902_s4  }
  0x37   : > { %191 = sbr.rel (%p948_p1) target bundleno = 402 (0x192), region = 32 }
  0x3c   : > { %797 = dma.done.wait (%p62_p4), [#allocation3], 64  }
  0x3d   : > { %799 = vsyncadd (%p62_p4), [#allocation3], 4294967232  ;;  %s198_s0 = sand.u32 1, %s919_s22   ;;  %s983_s5 = sand.u32 1, %s814_s13  }
  0x3e   : > { %s544_s7 = sshll.u32 %s983_s5, 6  ;;  %s199_s30 = scalar_lea.sflag [#allocation6], %s198_s0 }
  0x3f   : > { %s202_s9 = scalar_lea.vmem [#allocation5], %s544_s7 }
  0x40   : > { %801 = dma.done.wait (%p929_p10), %s199_s30, 1088  }
  0x41   : > { %803 = vsyncadd (%p929_p10), %s199_s30, 4294966208  ;;  %v593_v0 = vld [vmem:[%s202_s9 + $0x38] sm:$0xff]  ;;  %v592_v1 = vld [vmem:[%s202_s9 + $0x30] sm:$0xff]  ;;  %vm322_vm0 = vcmask 64512   ;;  %v828_v11 = vmov 1.0   ;;  %v393_v13 = vlaneseq  ;;  %s581_s4 = sshll.u32 %s919_s22, 7 }
  0x42   : > { %306 = vmatpush.bf16.msra.mxu0 %v593_v0  ;;  %v591_v2 = vld [vmem:[%s202_s9 + $0x28] sm:$0xff]  ;;  %v590_v3 = vld [vmem:[%s202_s9 + $0x20] sm:$0xff]  ;;  %v589_v4 = vld [vmem:[%s202_s9 + $0x18] sm:$0xff]  ;;  %v398_v16 = vstv %s581_s4  ;;  %s545_s25 = sshll.u32 %s983_s5, 2  ;;  %s546_s11 = sshll.u32 %s983_s5, 3 }
  0x43   : > { %v588_v5 = vld [vmem:[%s202_s9 + $0x10] sm:$0xff]  ;;  %v587_v6 = vld [vmem:[%s202_s9 + $0x8] sm:$0xff]  ;;  %v586_v7 = vld [vmem:[%s202_s9] sm:$0xff]  ;;  %v394_v14 = vshrl.u32 %v393_v13, 7  ;;  %v396_v15 = vand.u32 127, %v393_v13  ;;  %s212_s6 = scalar_lea.vmem [#allocation7], %s545_s25 }
  0x44   : > { %v241_v8 = vld [vmem:[#allocation2] sm:$0xf]  ;;  %v319_v37 = vld [vmem:[%s212_s6] sm:$0x1]  ;;  %v320_v42 = vld [vmem:[%s212_s6 + $0x1] sm:$0x1] }
  0x45   : > { %v399_v17 = vadd.s32 %v398_v16, %v396_v15  ;;  %v400_v18 = vmul.u32 256, %v394_v14  ;;  %v321_v48 = vld [vmem:[%s212_s6 + $0x2] sm:$0x1]  ;;  %s583_s17 = sshll.u32 %s919_s22, 3  ;;  %s240_s21 = scalar_lea.vmem [#allocation8], %s546_s11 }
  0x46   : > { %307 = vmatpush.bf16.msra.mxu0 %v592_v1  ;;  %s427_s24 = scalar_lea.hbm %s1029_s3, %s583_s17  ;;  %s429_s28 = sshll.u32 %s240_s21, 4  ;;  %s430_s28 = int_to_ptr.vmem [resolvable:$true] %s429_s28 }
  0x47   : > { %v401_v20 = vadd.s32 %v400_v18, %v399_v17  ;;  %s431_s29 = sshll.u32 %s427_s24, 4  ;;  %s417_s22 = scalar_lea.sflag [#allocation4], %s983_s5  ;;  %s432_s29 = int_to_ptr.hbm [resolvable:$true] %s431_s29 }
  0x48   : > { %s766_s8 = sshra.s32 %s432_s29, 4  ;;  %s772_s7 = scalar_lea.hbm %s1029_s3, 16  ;;  %s767_s8 = int_to_ptr.hbm [resolvable:$true] %s766_s8 }
  0x49   : > { %v402_v22 = vxor.u32 1234, %v401_v20  ;;  %s768_s10 = scalar_lea.hbm %s767_s8, 8  ;;  %p773_p4 = scmp.lt.s32.totalorder %s767_s8, %s1029_s3 }
  0x4a   : > { %308 = vmatpush.bf16.msra.mxu0 %v591_v2  ;;  %p769_p3 = scmp.ne.s32.totalorder %s767_s8, %s768_s10  ;;  %p774_p10 = scmp.lt.s32.totalorder %s772_s7, %s768_s10 }
  0x4b   : > { %v403_v26 = vshrl.u32 %v402_v22, 16 }
  0x4c   : > { %p770_p6 = pnand %p769_p3, %p936_p11  ;;  %p775_p1 = por %p774_p10, %p773_p4 }
  0x4d   : > { %v404_v29 = vxor.u32 %v403_v26, %v402_v22 }
  0x4e   : > { %309 = vmatpush.bf16.msra.mxu0 %v590_v3  ;;  %p771_p8 = pneg %p770_p6 }
  0x4f   : > { %v405_v31 = vmul.u32 2146121005, %v404_v29 }
  0x50   : > { %p776_p5 = pnand %p775_p1, %p771_p8 }
  0x51   : > { %v406_v32 = vshrl.u32 %v405_v31, 15 }
  0x52   : > { %310 = vmatpush.bf16.msra.mxu0 %v589_v4 }
  0x53   : > { %v407_v36 = vxor.u32 %v406_v32, %v405_v31 }
  0x55   : > { %v408_v40 = vmul.u32 2221713035, %v407_v36 }
  0x56   : > { %311 = vmatpush.bf16.msra.mxu0 %v588_v5 }
  0x57   : > { %v409_v45 = vshrl.u32 %v408_v40, 16 }
  0x59   : > { %v410_v51 = vxor.u32 %v409_v45, %v408_v40 }
  0x5a   : > { %312 = vmatpush.bf16.msra.mxu0 %v587_v6 }
  0x5b   : > { %v411_v55 = vand.u32 2147483648, %v410_v51 }
  0x5d   : > { %vm412_vm4 = vcmp.eq.s32.totalorder %v411_v55, 0 }
  0x5e   : > { %313 = vmatpush.bf16.msra.mxu0 %v586_v7 }
  0x61   : > { %314 = vmatmul.bf16.vlgmr.msra.gmra.mxu0 %v241_v8 }
  0xde   : > { %v315_v9 = vpop.f32.mrf.mxu0 }
  0xdf   : > { %341 = vmatpush.msra.mxu1 %v315_v9  ;;  %v346_v10 = vmul.f32 %v315_v9, %v315_v9 }
  0xe0   : > { %579 = vmatmul.msk.f32.vlgmr.msra.gmra.mxu1 %vm322_vm0, %v828_v11 }
  0xe1   : > { %362 = vmatpush.msra.mxu2 %v346_v10 }
  0xe2   : > { %580 = vmatmul.msk.f32.vlgmr.msra.gmra.mxu2 %vm322_vm0, %v828_v11 }
  0xe6   : > { %v317_v12 = vpop.f32.mrf.mxu0 }
 0x15d   : > { %v343_v19 = vpop.f32.mrf.mxu1 }
 0x15e   : > { %v367_v21 = vmul.f32 0.125, %v343_v19 }
 0x160   : > { %v369_v23 = vmul.f32 %v367_v21, %v367_v21  ;;  %v384_v41 = vadd.f32 %v367_v21, %v319_v37 }
 0x162   : > { %v385_v46 = vsub.f32 %v319_v37, %v384_v41 }
 0x165   : > { %v364_v24 = vpop.f32.mrf.mxu2 }
 0x166   : > { %v368_v25 = vmul.f32 0.125, %v364_v24 }
 0x168   : > { %v370_v27 = vsub.f32 %v368_v25, %v369_v23 }
 0x16a   : > { %v371_v28 = vmax.f32 %v370_v27, 0.0 }
 0x16c   : > { %v372_v30 = vadd.f32 1e-05, %v371_v28 }
 0x16e   : > { %660 = vrsqrt.f32 %v372_v30  ;;  %vm379_vm2 = vweird.f32 %v372_v30 }
 0x174   : > { %v661_v33 = vpop.eup %660 }
 0x175   : > { %v374_v34 = vmul.f32 %v661_v33, %v372_v30  ;;  %vm380_vm1 = vweird.f32 %v661_v33 }
 0x176   : > { %vm381_vm3 = vmor %vm379_vm2, %vm380_vm1 }
 0x177   : > { %v375_v35 = vmul.f32 %v661_v33, %v374_v34 }
 0x179   : > { %v376_v38 = vmul.f32 0.5, %v375_v35 }
 0x17b   : > { %v377_v39 = vsub.f32 1.5, %v376_v38 }
 0x17d   : > { %v378_v43 = vmul.f32 %v661_v33, %v377_v39 }
 0x17f   : > { %v382_v44 = vsel %vm381_vm3, %v661_v33, %v378_v43 }
 0x180   : > { %v383_v47 = vmul.f32 %v382_v44, %v320_v42 }
 0x182   : > { %v386_v49 = vmul.f32 %v385_v46, %v383_v47  ;;  %v388_v50 = vperm.slane %v383_v47, 0 }
 0x184   : > { %v387_v52 = vadd.f32 %v386_v49, %v321_v48  ;;  %v389_v53 = vmul.f32 %v388_v50, %v315_v9 }
 0x186   : > { %v390_v54 = vperm.slane %v387_v52, 0 }
 0x188   : > { %v391_v56 = vadd.f32 %v390_v54, %v389_v53 }
 0x18a   : > { %v392_v57 = vmax.f32 %v391_v56, 0.0 }
 0x18c   : > { %v413_v58 = vadd.f32 %v392_v57, %v392_v57 }
 0x18e   : > { %v414_v59 = vsel %vm412_vm4, %v413_v58, 0.0 }
 0x18f   : > { %415 = vst [vmem:[%s240_s21] sm:$0xff] %v414_v59 }
 0x190   : > { %779 = shalt.err (!%p776_p5)
}
 0x191   : > { %602 = dma.vmem_to_hbm [thread:$0]  (%p936_p11), %s430_s28, 128, %s432_s29, %s417_s22  }
 0x192 PF: > { %s443_s5 = sand.u32 1, %s810_s12   ;;  %p1037_p7 = scmp.ge.s32.totalorder %s822_s15, 2 }
 0x193   : > { %s444_s4 = scalar_lea.sflag [#allocation4], %s443_s5 }
 0x194   : > { %p616_p9 = pnand %p1037_p7, %p940_p12 }
 0x196   : > { %p617_p13 = pneg %p616_p9 }
 0x198   : > { %805 = dma.done.wait (%p617_p13), %s444_s4, 128  }
 0x199   : > { %807 = vsyncadd (%p617_p13), %s444_s4, 4294967168  ;;  %p17_p0 = scmp.ge.s32.totalorder %s870_s16, 4   ;;  %s1038_s12 = smov %s814_s13 }
 0x19a   : > { %s1039_s13 = smov %s818_s14  ;;  %s1040_s14 = smov %s881_s19 }
 0x19b   : > { %s1041_s15 = smov %s870_s16  ;;  %19 = sbr.rel (!%p17_p0) target bundleno = 8 (0x8), region = 93 }
 0x1a0   :  { %450 = vsyncpa [#allocation3], 1 }
 0x1a1   :  { %452 = vsyncpa [#allocation3 + $0x1], 1 }
 0x1a2   :  { %453 = vsyncpa [#allocation6], 1 }
 0x1a3   :  { %455 = vsyncpa [#allocation6 + $0x1], 1 }
 0x1a4   :  { %456 = vsyncpa [#allocation4], 1 }
 0x1a5   :  { %458 = vsyncpa [#allocation4 + $0x1], 1 }

</bundles_post_ra>
